<compile_context>
chip_gen: v7x
topology: tpu7x:2x2x1
jax: 0.10.0
libtpu: 0.0.40
codegen_flags: <defaults>
</compile_context>

<pallas_src>
import jax
import jax.numpy as jnp
from jax import lax
from jax.experimental import pallas as pl
from jax.experimental.pallas import tpu as pltpu


LANES = 128
CHUNK_ROWS = 512                      # rows per in-kernel accumulation chunk (256 KiB f32 temps)
TARGET_TILE_BYTES = 4 * 1024 * 1024   # ~4 MiB of HBM traffic per input per grid step
VMEM_LIMIT_BYTES = 40 * 1024 * 1024   # inputs double-buffered (<=16 MiB) + headroom; < v7x's 64 MiB


def _round_up(a, b):
    return ((a + b - 1) // b) * b


def _num_tensorcores():
    """Best-effort TensorCores per device (1 on v5e/v6e, 2 on v7x)."""
    candidates = []
    try:
        info = pltpu.get_tpu_info()
        for name in ("num_cores", "core_count", "num_tensorcores",
                     "num_cores_per_chip", "tensorcores_per_chip"):
            candidates.append(getattr(info, name, None))
    except Exception:
        pass
    try:
        candidates.append(getattr(jax.devices()[0], "num_cores", None))
    except Exception:
        pass
    for v in candidates:
        try:
            v = int(v)
        except (TypeError, ValueError):
            continue
        if v > 0:
            return max(1, min(v, 2))   # current chips have at most 2 TCs per device
    return 1


def _make_sse_kernel(row_tile, chunk_rows, nblocks, bps, last_valid):
    """Sum-of-squared-differences over (row_tile, 128) blocks.

    Accumulates per-lane partials into a resident (8, 128) f32 output block
    (one per split).  Only the ragged final block is row-masked.
    """
    n_chunks = row_tile // chunk_rows
    ragged = last_valid != row_tile

    def _chunk(x_ref, y_ref, o_ref, r0, limit):
        # Cast in-kernel (VPU) so the HBM->VMEM DMA stays at the input dtypes.
        xd = x_ref[pl.ds(r0, chunk_rows), :].astype(jnp.float32)
        yd = y_ref[pl.ds(r0, chunk_rows), :].astype(jnp.float32)
        d = xd - yd
        sq = d * d
        if limit is not None:
            row_ids = r0 + lax.broadcasted_iota(jnp.int32, sq.shape, 0)
            sq = jnp.where(row_ids < limit, sq, 0.0)
        # Sublane-regrouping reshape (free) + pure VPU adds onto (8, 128).
        o_ref[...] += sq.reshape(chunk_rows // 8, 8, LANES).sum(axis=0)

    def _block(x_ref, y_ref, o_ref, limit):
        # Static unrolled chunk loop keeps f32 temps capped at chunk size.
        for k in range(n_chunks):
            _chunk(x_ref, y_ref, o_ref, k * chunk_rows, limit)

    def kernel(x_ref, y_ref, o_ref):
        c = pl.program_id(0)          # split index ("parallel": one per TensorCore)
        i = pl.program_id(1)          # sequential reduction index within the split

        @pl.when(i == 0)
        def _():
            o_ref[...] = jnp.zeros_like(o_ref)

        if not ragged:
            _block(x_ref, y_ref, o_ref, None)
        else:
            g = c * bps + i           # global block id (always < nblocks: no phantom)

            @pl.when(g < nblocks - 1)
            def _():
                _block(x_ref, y_ref, o_ref, None)         # fast path, no masking

            @pl.when(g == nblocks - 1)
            def _():
                _block(x_ref, y_ref, o_ref, last_valid)   # ragged final block

    return kernel


def contact_map_estimation_loss(x, y):
    """((x - y) ** 2).sum() computed with a Pallas TPU streaming reduction."""
    assert x.shape == y.shape, "x and y must have the same shape"

    # Keep native dtypes (possibly different); the kernel casts tiles to f32.
    xf = jnp.ravel(x)
    yf = jnp.ravel(y)
    n = xf.shape[0]
    itemsize_x = jnp.dtype(xf.dtype).itemsize
    itemsize_y = jnp.dtype(yf.dtype).itemsize

    # Kernel handles the (8*128)-aligned prefix; the <1024-element tail (if
    # any) is a trivial jnp sum.  No padded copies of the full arrays.
    align = 8 * LANES
    n_main = (n // align) * align
    tail = n - n_main

    tail_loss = jnp.float32(0.0)
    if tail:
        xt = xf[n_main:].astype(jnp.float32)
        yt = yf[n_main:].astype(jnp.float32)
        tail_loss = jnp.sum((xt - yt) ** 2)

    if n_main == 0:                    # tiny input: no kernel needed
        return tail_loss

    xm = xf[:n_main] if tail else xf
    ym = yf[:n_main] if tail else yf
    rows = n_main // LANES             # always a multiple of 8
    x2d = xm.reshape(rows, LANES)      # free bitcast when tail == 0
    y2d = ym.reshape(rows, LANES)

    # ---- dtype-aware tile size ----
    max_itemsize = max(itemsize_x, itemsize_y)
    target_rows = max(CHUNK_ROWS,
                      (TARGET_TILE_BYTES // (LANES * max_itemsize))
                      // CHUNK_ROWS * CHUNK_ROWS)

    n_splits = _num_tensorcores()

    if rows <= CHUNK_ROWS:
        row_tile = rows                # single block, exactly the full extent
        chunk_rows = rows
        n_splits = 1
    else:
        chunk_rows = CHUNK_ROWS
        # row_tile <= rows, multiple of CHUNK_ROWS: every block starts in-bounds.
        row_tile = min(target_rows, rows // CHUNK_ROWS * CHUNK_ROWS)

    nblocks = pl.cdiv(rows, row_tile)

    if n_splits > 1:
        if nblocks < n_splits:
            n_splits = 1
        elif nblocks % n_splits:
            # Reshape the block count so it divides evenly across cores:
            # keeps the split but removes the phantom (wasted-DMA) block.
            nb = _round_up(nblocks, n_splits)
            rt = _round_up(pl.cdiv(rows, nb), CHUNK_ROWS)
            if pl.cdiv(rows, rt) % n_splits == 0:
                row_tile = rt
                nblocks = pl.cdiv(rows, rt)
            else:
                n_splits = 1

    bps = nblocks // n_splits if n_splits > 1 else nblocks
    last_valid = rows - (nblocks - 1) * row_tile

    kernel = _make_sse_kernel(row_tile, chunk_rows, nblocks, bps, last_valid)

    def in_map(c, i):
        return (c * bps + i, 0)

    partials = pl.pallas_call(
        kernel,
        out_shape=jax.ShapeDtypeStruct((n_splits * 8, LANES), jnp.float32),
        grid_spec=pltpu.PrefetchScalarGridSpec(
            num_scalar_prefetch=0,
            grid=(n_splits, bps),
            in_specs=[
                pl.BlockSpec((row_tile, LANES), in_map),
                pl.BlockSpec((row_tile, LANES), in_map),
            ],
            # Lane-dense (8, 128) accumulator block per split, revisited across
            # the inner (reduction) axis.
            out_specs=pl.BlockSpec((8, LANES), lambda c, i: (c, 0)),
        ),
        compiler_params=pltpu.CompilerParams(
            # TODO(synk): switch axis 0 to pltpu.CORE_PARALLEL once a v7x trace
            # confirms plain "parallel" does not shard across its 2 TensorCores.
            dimension_semantics=("parallel", "arbitrary"),
            vmem_limit_bytes=VMEM_LIMIT_BYTES,
        ),
        cost_estimate=pl.CostEstimate(
            flops=3 * max(n, 1),
            transcendentals=0,
            bytes_accessed=n_main * (itemsize_x + itemsize_y)
                           + n_splits * 8 * LANES * 4,
        ),
    )(x2d, y2d)

    result = jnp.sum(partials)
    if tail:
        result = result + tail_loss
    return result


if __name__ == "__main__":
    key = jax.random.PRNGKey(0)
    k1, k2, k3, k4, k5, k6, k7, k8 = jax.random.split(key, 8)

    def ref_loss(a, b):
        return jnp.sum((a.astype(jnp.float32) - b.astype(jnp.float32)) ** 2)

    def check(a, b):
        out = jax.block_until_ready(contact_map_estimation_loss(a, b))
        ref = ref_loss(a, b)
        assert jnp.allclose(out, ref, rtol=1e-5, atol=1e-3), (out, ref)

    # 1) Small NCHW-shaped input consistent with the module's usage:
    #    single-block kernel path.
    x = jax.random.normal(k1, (2, 4, 16, 16), dtype=jnp.float32)
    y = jax.random.normal(k2, (2, 4, 16, 16), dtype=jnp.float32)
    check(x, y)

    # 2) Awkward (non-1024-divisible) element count: kernel prefix + jnp tail,
    #    no padded copies of the inputs.
    x = jax.random.normal(k3, (3, 5, 33, 7), dtype=jnp.float32)
    y = jax.random.normal(k4, (3, 5, 33, 7), dtype=jnp.float32)
    check(x, y)

    # 3) Multi-block grid with a ragged (row-masked) final block and a
    #    chunked in-kernel accumulation loop (rows % row_tile != 0).
    x = jax.random.normal(k5, (2, 4, 128, 160), dtype=jnp.float32)
    y = jax.random.normal(k6, (2, 4, 128, 160), dtype=jnp.float32)
    check(x, y)

    # 4) Mixed native dtypes: DMA'd as-is, cast to f32 on the VPU in-kernel.
    x = jax.random.normal(k7, (2, 4, 16, 16), dtype=jnp.bfloat16)
    y = jax.random.normal(k8, (2, 4, 16, 16), dtype=jnp.float32)
    check(x, y)

    print("KERNEL_OK")
</pallas_src>

<mosaic_0001>
module attributes {stable_mosaic.version = 11 : i64} {
  func.func @kernel(%arg0: i32, %arg1: i32, %arg2: memref<16x128xf32, #tpu.memory_space<vmem>>, %arg3: memref<16x128xf32, #tpu.memory_space<vmem>>, %arg4: memref<8x128xf32, #tpu.memory_space<vmem>>) attributes {dimension_semantics = [#tpu.dimension_semantics<parallel>, #tpu.dimension_semantics<arbitrary>], iteration_bounds = array<i64: 1, 1>, scalar_prefetch = 0 : i64, scratch_operands = 0 : i64, tpu.core_type = #tpu.core_type<tc>, window_params = [{transform_indices = @transform_0, window_bounds = array<i64: 16, 128>}, {transform_indices = @transform_1, window_bounds = array<i64: 16, 128>}, {transform_indices = @transform_2, window_bounds = array<i64: 8, 128>}]} {
    %c0_i32 = arith.constant 0 : i32
    %0 = arith.cmpi eq, %arg1, %c0_i32 : i32
    %1 = arith.extui %0 : i1 to i32
    %c0_i32_0 = arith.constant 0 : i32
    %2 = arith.cmpi ne, %1, %c0_i32_0 : i32
    scf.if %2 {
      %cst_8 = arith.constant 0.000000e+00 : f32
      %12 = vector.broadcast %cst_8 : f32 to vector<8x128xf32>
      %c0_9 = arith.constant 0 : index
      %c0_10 = arith.constant 0 : index
      %13 = vector.load %arg4[%c0_9, %c0_10] : memref<8x128xf32, #tpu.memory_space<vmem>>, vector<8x128xf32>
      tpu.vector_store %arg4[%c0_9, %c0_10], %12 {strides = array<i32>} : memref<8x128xf32, #tpu.memory_space<vmem>>, vector<8x128xf32>,
    } else {
    }
    %c0 = arith.constant 0 : index
    %c0_1 = arith.constant 0 : index
    %3 = vector.load %arg2[%c0, %c0_1] : memref<16x128xf32, #tpu.memory_space<vmem>>, vector<16x128xf32>
    %c0_2 = arith.constant 0 : index
    %c0_3 = arith.constant 0 : index
    %4 = vector.load %arg3[%c0_2, %c0_3] : memref<16x128xf32, #tpu.memory_space<vmem>>, vector<16x128xf32>
    %5 = arith.subf %3, %4 : vector<16x128xf32>
    %6 = arith.mulf %5, %5 : vector<16x128xf32>
    %c0_4 = arith.constant 0 : index
    %c0_5 = arith.constant 0 : index
    %7 = vector.load %arg4[%c0_4, %c0_5] : memref<8x128xf32, #tpu.memory_space<vmem>>, vector<8x128xf32>
    %8 = vector.shape_cast %6 : vector<16x128xf32> to vector<2x8x128xf32>
    %cst = arith.constant dense<0.000000e+00> : vector<8x128xf32>
    %9 = vector.multi_reduction <add>, %8, %cst [0] : vector<2x8x128xf32> to vector<8x128xf32>
    %10 = arith.addf %7, %9 : vector<8x128xf32>
    %c0_6 = arith.constant 0 : index
    %c0_7 = arith.constant 0 : index
    %11 = vector.load %arg4[%c0_6, %c0_7] : memref<8x128xf32, #tpu.memory_space<vmem>>, vector<8x128xf32>
    tpu.vector_store %arg4[%c0_6, %c0_7], %10 {strides = array<i32>} : memref<8x128xf32, #tpu.memory_space<vmem>>, vector<8x128xf32>,
    return
  }
  func.func @transform_0(%arg0: i32, %arg1: i32) -> (i32, i32) {
    %c1_i32 = arith.constant 1 : i32
    %0 = arith.muli %arg0, %c1_i32 : i32
    %1 = arith.addi %0, %arg1 : i32
    %c0_i32 = arith.constant 0 : i32
    %c0_i32_0 = arith.constant 0 : i32
    return %1, %c0_i32 : i32, i32
  }
  func.func @transform_1(%arg0: i32, %arg1: i32) -> (i32, i32) {
    %c1_i32 = arith.constant 1 : i32
    %0 = arith.muli %arg0, %c1_i32 : i32
    %1 = arith.addi %0, %arg1 : i32
    %c0_i32 = arith.constant 0 : i32
    %c0_i32_0 = arith.constant 0 : i32
    return %1, %c0_i32 : i32, i32
  }
  func.func @transform_2(%arg0: i32, %arg1: i32) -> (i32, i32) {
    %c0_i32 = arith.constant 0 : i32
    %c0_i32_0 = arith.constant 0 : i32
    return %arg0, %c0_i32 : i32, i32
  }
}

</mosaic_0001>

<bundles_post_ra>
// kernel: tpu_custom_call.1
= control target key start
LH: loop header
LB: loop body
LE: loop exit
PB: predicated region body
PF: predicated region fallthrough
CT: control target
= control target key end

     0   :  { %7 = vsyncpa [#allocation3], 0  ;;  %s219_s0 = inlined_call_operand.hbm [shape: f32[16,128], index: 0, kind: input, shape index: {}]   ;;  %s220_s1 = inlined_call_operand.hbm [shape: f32[16,128], index: 1, kind: input, shape index: {}]   ;;  %s221_s2 = inlined_call_operand.hbm [shape: f32[8,128], index: 2, kind: output, shape index: {}]  }
   0x1   :  { %8 = vsyncpa [#allocation6], 0 }
   0x2   :  { %9 = vsyncpa [#allocation4], 0  ;;  %s163_s9 = smov [#allocation2]   ;;  %s91_s13 = scalar_lea.hbm %s219_s0, 256 }
   0x3   :  { %s19_s10 = sshll.u32 %s163_s9, 4  ;;  %p92_p0 = scmp.ne.s32.totalorder %s219_s0, %s91_s13  ;;  %s20_s10 = int_to_ptr.vmem [resolvable:$true] %s19_s10 }
   0x4   :  { %p95_p1 = scmp.lt.u32.totalorder %s91_s13, %s219_s0 }
   0x6   :  { %p97_p2 = pnand %p95_p1, %p92_p0 }
   0x8   :  { %100 = shalt.err (!%p97_p2)
}
   0x9   :  { %s101_s18 = scalar_lea.vmem %s20_s10, 256  ;;  %p106_p4 = scmp.lt.s32.totalorder %s20_s10, %s20_s10 }
   0xa   :  { %p102_p3 = scmp.ne.s32.totalorder %s20_s10, %s101_s18  ;;  %p107_p5 = scmp.lt.s32.totalorder %s101_s18, %s101_s18 }
   0xc   :  { %p108_p6 = por %p107_p5, %p106_p4 }
   0xe   :  { %p109_p7 = pnand %p108_p6, %p102_p3 }
  0x10   :  { %112 = shalt.err (!%p109_p7)
}
  0x11   :  { %s164_s19 = smov 128   ;;  %s165_s20 = smov 8  }
  0x12   :  { %25 = dma.hbm_to_vmem [thread:$0]  %s219_s0, 256, %s20_s10, [#allocation3], %s164_s19, %s164_s19, %s165_s20  }
  0x13   :  { %s166_s23 = smov [#allocation5]   ;;  %s113_s27 = scalar_lea.hbm %s220_s1, 256 }
  0x14   :  { %s35_s24 = sshll.u32 %s166_s23, 4  ;;  %p114_p8 = scmp.ne.s32.totalorder %s220_s1, %s113_s27  ;;  %s36_s24 = int_to_ptr.vmem [resolvable:$true] %s35_s24 }
  0x15   :  { %p117_p9 = scmp.lt.u32.totalorder %s113_s27, %s220_s1 }
  0x17   :  { %p119_p10 = pnand %p117_p9, %p114_p8 }
  0x19   :  { %122 = shalt.err (!%p119_p10)
}
  0x1a   :  { %s123_s4 = scalar_lea.vmem %s36_s24, 256  ;;  %p128_p12 = scmp.lt.s32.totalorder %s36_s24, %s36_s24 }
  0x1b   :  { %p124_p11 = scmp.ne.s32.totalorder %s36_s24, %s123_s4  ;;  %p129_p13 = scmp.lt.s32.totalorder %s123_s4, %s123_s4 }
  0x1d   :  { %p130_p0 = por %p129_p13, %p128_p12 }
  0x1f   :  { %p131_p1 = pnand %p130_p0, %p124_p11 }
  0x21   :  { %134 = shalt.err (!%p131_p1)
}
  0x22   :  { %41 = dma.hbm_to_vmem [thread:$0]  %s220_s1, 256, %s36_s24, [#allocation6], %s164_s19, %s164_s19, %s165_s20  }
  0x23   :  { %157 = dma.done.wait [#allocation3], 256  }
  0x24   :  { %158 = vsyncadd [#allocation3], 4294967040 }
  0x25   :  { %159 = dma.done.wait [#allocation6], 256  }
  0x26   :  { %160 = vsyncadd [#allocation6], 4294967040  ;;  %v57_v0 = vld [vmem:[#allocation2] sm:$0xff]  ;;  %v58_v1 = vld [vmem:[#allocation2 + $0x8] sm:$0xff]  ;;  %s167_s6 = smov [#allocation7]  }
  0x27   :  { %v59_v2 = vld [vmem:[#allocation5] sm:$0xff]  ;;  %v60_v3 = vld [vmem:[#allocation5 + $0x8] sm:$0xff]  ;;  %s75_s7 = sshll.u32 %s167_s6, 4  ;;  %s76_s7 = int_to_ptr.vmem [resolvable:$true] %s75_s7 }
  0x28   :  { %v61_v4 = vsub.f32 %v57_v0, %v59_v2  ;;  %v62_v5 = vsub.f32 %v58_v1, %v60_v3  ;;  %s135_s8 = scalar_lea.vmem %s76_s7, 128  ;;  %p140_p3 = scmp.lt.s32.totalorder %s76_s7, %s76_s7 }
  0x29   :  { %p136_p2 = scmp.ne.s32.totalorder %s76_s7, %s135_s8  ;;  %p141_p4 = scmp.lt.s32.totalorder %s135_s8, %s135_s8 }
  0x2a   :  { %v63_v6 = vmul.f32 %v61_v4, %v61_v4  ;;  %v64_v7 = vmul.f32 %v62_v5, %v62_v5 }
  0x2b   :  { %p142_p5 = por %p141_p4, %p140_p3 }
  0x2c   :  { %v66_v8 = vadd.f32 %v64_v7, %v63_v6 }
  0x2d   :  { %p143_p6 = pnand %p142_p5, %p136_p2 }
  0x2e   :  { %68 = vst [vmem:[#allocation7] sm:$0xff] %v66_v8 }
  0x2f   :  { %146 = shalt.err (!%p143_p6)
}
  0x30   :  { %s147_s10 = scalar_lea.hbm %s221_s2, 128 }
  0x31   :  { %p148_p7 = scmp.ne.s32.totalorder %s221_s2, %s147_s10  ;;  %p151_p8 = scmp.lt.u32.totalorder %s147_s10, %s221_s2 }
  0x33   :  { %p153_p9 = pnand %p151_p8, %p148_p7 }
  0x35   :  { %156 = shalt.err (!%p153_p9)
}
  0x36   :  { %78 = dma.vmem_to_hbm [thread:$0]  %s76_s7, 128, %s221_s2, [#allocation4]  }
  0x37   :  { %161 = dma.done.wait [#allocation4], 128  }
  0x38   :  { %162 = vsyncadd [#allocation4], 4294967168 }
  0x39   :  { %82 = vsyncpa [#allocation3], 1 }
  0x3a   :  { %83 = vsyncpa [#allocation6], 1 }
  0x3b   :  { %84 = vsyncpa [#allocation4], 1 }

</bundles_post_ra>
